<compile_context>
chip_gen: v7x
topology: tpu7x:2x2x1
jax: 0.10.0
libtpu: 0.0.40
codegen_flags: <defaults>
</compile_context>

<pallas_src>
import jax
import jax.numpy as jnp
from jax.experimental import pallas as pl
from jax.experimental.pallas import tpu as pltpu

_LANE = 128      # lane width (last-dim tiling unit)
_SUBLANE = 8     # f32 sublane count (second-to-last dim tiling unit)


def _round_up(x, m):
    return ((x + m - 1) // m) * m


def mlp1_kernel(x_ref, w1_ref, b1_ref, w2_ref, b2_ref, o_ref):
    # hidden = relu(x @ W1 + b1)
    h = jnp.dot(x_ref[...], w1_ref[...], preferred_element_type=jnp.float32)
    h = h + b1_ref[...]
    h = jnp.maximum(h, 0.0)
    # output = hidden @ W2 + b2   (W2 / b2 are lane-padded to 128 columns)
    out = jnp.dot(h, w2_ref[...], preferred_element_type=jnp.float32)
    out = out + b2_ref[...]
    o_ref[...] = out.astype(o_ref.dtype)


def mlp1_forward(x, w1, b1, w2, b2, input_size, tile_b=2048):
    """Fused MLP1 forward:  relu(x.view(-1, input_size) @ W1 + b1) @ W2 + b2."""
    # Glue: PyTorch's x.view(-1, input_size)
    x2d = x.reshape(-1, input_size)
    batch = x2d.shape[0]
    hidden = w1.shape[1]
    num_classes = w2.shape[1]

    # --- Lane-dense output: pad the class dimension up to a multiple of 128.
    n_pad = _round_up(num_classes, _LANE)
    if n_pad != num_classes:
        w2p = jnp.pad(w2, ((0, 0), (0, n_pad - num_classes)))
        b2p = jnp.pad(b2, ((0, 0), (0, n_pad - num_classes)))
    else:
        w2p, b2p = w2, b2

    # --- Batch tiling: sublane-aligned tile, batch zero-padded to a tile multiple.
    tb = min(tile_b, _round_up(batch, _SUBLANE))
    tb = _round_up(tb, _SUBLANE)
    batch_pad = _round_up(batch, tb)
    if batch_pad != batch:
        x2d = jnp.pad(x2d, ((0, batch_pad - batch), (0, 0)))

    grid = (batch_pad // tb,)

    out = pl.pallas_call(
        mlp1_kernel,
        out_shape=jax.ShapeDtypeStruct((batch_pad, n_pad), x2d.dtype),
        grid_spec=pl.GridSpec(
            grid=grid,
            in_specs=[
                # x: streamed per batch tile (double-buffered by Pallas).
                pl.BlockSpec((tb, input_size), lambda i: (i, 0)),
                # Weights / biases: whole-array blocks, VMEM-resident across steps.
                pl.BlockSpec((input_size, hidden), lambda i: (0, 0)),
                pl.BlockSpec((1, hidden), lambda i: (0, 0)),
                pl.BlockSpec((hidden, n_pad), lambda i: (0, 0)),
                pl.BlockSpec((1, n_pad), lambda i: (0, 0)),
            ],
            out_specs=pl.BlockSpec((tb, n_pad), lambda i: (i, 0)),
        ),
        compiler_params=pltpu.CompilerParams(
            # Batch tiles are independent -> shardable across TensorCores (v7x).
            dimension_semantics=("parallel",),
            # Allow large batch tiles; 48 MiB is safe on v5e/v6e (128 MiB) and
            # leaves headroom under v7x's 64 MiB physical VMEM.
            vmem_limit_bytes=48 * 1024 * 1024,
        ),
    )(x2d, w1, b1, w2p, b2p)

    # Strip batch and class padding.
    return out[:batch, :num_classes]


if __name__ == "__main__":
    # Small shapes consistent with the module.
    input_size = 64      # x.view(-1, 64)
    hidden_size = 32
    num_classes = 10

    key = jax.random.PRNGKey(0)
    kx, kw1, kb1, kw2, kb2 = jax.random.split(key, 5)

    # Input: (2, 4, 16) -> flattened to (2, 64) inside the wrapper.
    x = jax.random.normal(kx, (2, 4, 16), dtype=jnp.float32)

    # Deterministic parameter init (nn.Linear-style uniform bounds).
    bound1 = 1.0 / (input_size ** 0.5)
    w1 = jax.random.uniform(kw1, (input_size, hidden_size), jnp.float32, -bound1, bound1)
    b1 = jax.random.uniform(kb1, (1, hidden_size), jnp.float32, -bound1, bound1)

    bound2 = 1.0 / (hidden_size ** 0.5)
    w2 = jax.random.uniform(kw2, (hidden_size, num_classes), jnp.float32, -bound2, bound2)
    b2 = jax.random.uniform(kb2, (1, num_classes), jnp.float32, -bound2, bound2)

    # --- Check 1: tiny batch (2 rows -> one padded 8-row tile).
    out = mlp1_forward(x, w1, b1, w2, b2, input_size)
    out = jax.block_until_ready(out)

    x2d = x.reshape(-1, input_size)
    ref = jnp.maximum(x2d @ w1 + b1, 0.0) @ w2 + b2
    assert out.shape == (2, num_classes)
    assert jnp.allclose(out, ref, atol=1e-5, rtol=1e-5)

    # --- Check 2: exercise the multi-tile grid path with batch padding
    # (20 rows, tile_b=8 -> grid=(3,), 4 padded rows sliced off).
    x_big = jax.random.normal(jax.random.PRNGKey(1), (20, input_size), dtype=jnp.float32)
    out_big = mlp1_forward(x_big, w1, b1, w2, b2, input_size, tile_b=8)
    out_big = jax.block_until_ready(out_big)
    ref_big = jnp.maximum(x_big @ w1 + b1, 0.0) @ w2 + b2
    assert out_big.shape == (20, num_classes)
    assert jnp.allclose(out_big, ref_big, atol=1e-5, rtol=1e-5)

    print("KERNEL_OK")
</pallas_src>

<mosaic_0001>
module attributes {stable_mosaic.version = 11 : i64} {
  func.func @mlp1_kernel(%arg0: i32, %arg1: memref<8x64xf32, #tpu.memory_space<vmem>>, %arg2: memref<64x32xf32, #tpu.memory_space<vmem>>, %arg3: memref<1x32xf32, #tpu.memory_space<vmem>>, %arg4: memref<32x128xf32, #tpu.memory_space<vmem>>, %arg5: memref<1x128xf32, #tpu.memory_space<vmem>>, %arg6: memref<8x128xf32, #tpu.memory_space<vmem>>) attributes {dimension_semantics = [#tpu.dimension_semantics<parallel>], iteration_bounds = array<i64: 1>, scalar_prefetch = 0 : i64, scratch_operands = 0 : i64, tpu.core_type = #tpu.core_type<tc>, window_params = [{transform_indices = @transform_0, window_bounds = array<i64: 8, 64>}, {pipeline_mode = #tpu.pipeline_mode<synchronous>, transform_indices = @transform_1, window_bounds = array<i64: 64, 32>}, {pipeline_mode = #tpu.pipeline_mode<synchronous>, transform_indices = @transform_2, window_bounds = array<i64: 1, 32>}, {pipeline_mode = #tpu.pipeline_mode<synchronous>, transform_indices = @transform_3, window_bounds = array<i64: 32, 128>}, {pipeline_mode = #tpu.pipeline_mode<synchronous>, transform_indices = @transform_4, window_bounds = array<i64: 1, 128>}, {transform_indices = @transform_5, window_bounds = array<i64: 8, 128>}]} {
    %c0 = arith.constant 0 : index
    %c0_0 = arith.constant 0 : index
    %0 = vector.load %arg1[%c0, %c0_0] : memref<8x64xf32, #tpu.memory_space<vmem>>, vector<8x64xf32>
    %c0_1 = arith.constant 0 : index
    %c0_2 = arith.constant 0 : index
    %1 = vector.load %arg2[%c0_1, %c0_2] : memref<64x32xf32, #tpu.memory_space<vmem>>, vector<64x32xf32>
    %cst = arith.constant dense<0.000000e+00> : vector<8x32xf32>
    %2 = tpu.matmul %0, %1, %cst {dimension_numbers = #tpu.dot_dimension_numbers<[1], [0], [0], [1], [0, 0, 1, 1], [], []>} : vector<8x64xf32>, vector<64x32xf32>, vector<8x32xf32> -> vector<8x32xf32>
    %c0_3 = arith.constant 0 : index
    %c0_4 = arith.constant 0 : index
    %3 = vector.load %arg3[%c0_3, %c0_4] : memref<1x32xf32, #tpu.memory_space<vmem>>, vector<1x32xf32>
    %4 = vector.broadcast %3 : vector<1x32xf32> to vector<8x32xf32>
    %5 = arith.addf %2, %4 : vector<8x32xf32>
    %cst_5 = arith.constant 0.000000e+00 : f32
    %6 = vector.broadcast %cst_5 : f32 to vector<8x32xf32>
    %7 = arith.maximumf %5, %6 : vector<8x32xf32>
    %c0_6 = arith.constant 0 : index
    %c0_7 = arith.constant 0 : index
    %8 = vector.load %arg4[%c0_6, %c0_7] : memref<32x128xf32, #tpu.memory_space<vmem>>, vector<32x128xf32>
    %cst_8 = arith.constant dense<0.000000e+00> : vector<8x128xf32>
    %9 = tpu.matmul %7, %8, %cst_8 {dimension_numbers = #tpu.dot_dimension_numbers<[1], [0], [0], [1], [0, 0, 1, 1], [], []>} : vector<8x32xf32>, vector<32x128xf32>, vector<8x128xf32> -> vector<8x128xf32>
    %c0_9 = arith.constant 0 : index
    %c0_10 = arith.constant 0 : index
    %10 = vector.load %arg5[%c0_9, %c0_10] : memref<1x128xf32, #tpu.memory_space<vmem>>, vector<1x128xf32>
    %11 = vector.broadcast %10 : vector<1x128xf32> to vector<8x128xf32>
    %12 = arith.addf %9, %11 : vector<8x128xf32>
    %c0_11 = arith.constant 0 : index
    %c0_12 = arith.constant 0 : index
    %13 = vector.load %arg6[%c0_11, %c0_12] : memref<8x128xf32, #tpu.memory_space<vmem>>, vector<8x128xf32>
    tpu.vector_store %arg6[%c0_11, %c0_12], %12 {strides = array<i32>} : memref<8x128xf32, #tpu.memory_space<vmem>>, vector<8x128xf32>,
    return
  }
  func.func @transform_0(%arg0: i32) -> (i32, i32) {
    %c0_i32 = arith.constant 0 : i32
    %c0_i32_0 = arith.constant 0 : i32
    return %arg0, %c0_i32 : i32, i32
  }
  func.func @transform_1(%arg0: i32) -> (i32, i32) {
    %c0_i32 = arith.constant 0 : i32
    %c0_i32_0 = arith.constant 0 : i32
    %c0_i32_1 = arith.constant 0 : i32
    return %c0_i32, %c0_i32_0 : i32, i32
  }
  func.func @transform_2(%arg0: i32) -> (i32, i32) {
    %c0_i32 = arith.constant 0 : i32
    %c0_i32_0 = arith.constant 0 : i32
    %c0_i32_1 = arith.constant 0 : i32
    return %c0_i32, %c0_i32_0 : i32, i32
  }
  func.func @transform_3(%arg0: i32) -> (i32, i32) {
    %c0_i32 = arith.constant 0 : i32
    %c0_i32_0 = arith.constant 0 : i32
    %c0_i32_1 = arith.constant 0 : i32
    return %c0_i32, %c0_i32_0 : i32, i32
  }
  func.func @transform_4(%arg0: i32) -> (i32, i32) {
    %c0_i32 = arith.constant 0 : i32
    %c0_i32_0 = arith.constant 0 : i32
    %c0_i32_1 = arith.constant 0 : i32
    return %c0_i32, %c0_i32_0 : i32, i32
  }
  func.func @transform_5(%arg0: i32) -> (i32, i32) {
    %c0_i32 = arith.constant 0 : i32
    %c0_i32_0 = arith.constant 0 : i32
    return %arg0, %c0_i32 : i32, i32
  }
}

</mosaic_0001>

<bundles_post_ra>
// kernel: tpu_custom_call.1
= control target key start
LH: loop header
LB: loop body
LE: loop exit
PB: predicated region body
PF: predicated region fallthrough
CT: control target
= control target key end

     0   :  { %v306_v3 = vmov 0.0|0.0   ;;  %vm307_vm0 = vmmov 0   ;;  %v308_v6 = vmov 0.0   ;;  %s397_s0 = inlined_call_operand.vmem [shape: f32[8,64], index: 0, kind: input, shape index: {}]   ;;  %s398_s1 = inlined_call_operand.vmem [shape: f32[64,32], index: 1, kind: input, shape index: {}]   ;;  %s399_s2 = inlined_call_operand.vmem [shape: f32[1,32], index: 2, kind: input, shape index: {}]   ;;  %s400_s3 = inlined_call_operand.vmem [shape: f32[32,128], index: 3, kind: input, shape index: {}]   ;;  %s401_s4 = inlined_call_operand.vmem [shape: f32[1,128], index: 4, kind: input, shape index: {}]   ;;  %s402_s5 = inlined_call_operand.hbm [shape: f32[8,128], index: 5, kind: output, shape index: {}]  }
   0x1   :  { %v22_v0 = vld [vmem:[%s398_s1] sm:$0xff]  ;;  %v23_v1 = vld [vmem:[%s398_s1 + $0x8] sm:$0xff]  ;;  %v24_v2 = vld [vmem:[%s398_s1 + $0x10] sm:$0xff]  ;;  %260 = vmatprep.subr.bf16.mxu0 %v306_v3  ;;  %246 = vmatprep.mubr.msk.f32.mxu0 %vm307_vm0, %v308_v6 }
   0x2   :  { %v261_v4 = vpack.c.bf16 %v23_v1, %v22_v0  ;;  %v25_v5 = vld [vmem:[%s398_s1 + $0x18] sm:$0xff]  ;;  %272 = vmatprep.subr.bf16.mxu1 %v306_v3  ;;  %257 = vmatprep.mubr.msk.f32.mxu1 %vm307_vm0, %v308_v6  ;;  %v112_v8 = vld [vmem:[%s400_s3] sm:$0xff]  ;;  %v113_v9 = vld [vmem:[%s400_s3 + $0x8] sm:$0xff] }
   0x3   :  { %v264_v7 = vpack.c.bf16 %v25_v5, %v24_v2  ;;  %v26_v10 = vld [vmem:[%s398_s1 + $0x20] sm:$0xff]  ;;  %v27_v11 = vld [vmem:[%s398_s1 + $0x28] sm:$0xff]  ;;  %v273_v12 = vpack.c.bf16 %v113_v9, %v112_v8 }
   0x4   :  { %262 = vmatpush3.bf16.msra.mxu0 %v261_v4 }
   0x5   :  { %263 = vmatprep.subr.bf16.mxu0 %v306_v3 }
   0x6   :  { %10 = vsyncpa [#allocation3], 0  ;;  %274 = vmatpush3.bf16.msra.mxu1 %v273_v12  ;;  %v267_v13 = vpack.c.bf16 %v27_v11, %v26_v10  ;;  %v28_v14 = vld [vmem:[%s398_s1 + $0x30] sm:$0xff]  ;;  %v29_v15 = vld [vmem:[%s398_s1 + $0x38] sm:$0xff]  ;;  %vm37_vm1 = vcmask 523264   ;;  %vm123_vm2 = vcmask 261120  }
   0x7   :  { %275 = vmatprep.subr.bf16.mxu1 %v306_v3  ;;  %v270_v16 = vpack.c.bf16 %v29_v15, %v28_v14  ;;  %v21_v17 = vld [vmem:[%s397_s0] sm:$0xff]  ;;  %v114_v18 = vld [vmem:[%s400_s3 + $0x10] sm:$0xff]  ;;  %v115_v19 = vld [vmem:[%s400_s3 + $0x18] sm:$0xff]  ;;  %s309_s21 = smov [#allocation2]  }
   0x8   :  { %265 = vmatpush3.bf16.msra.mxu0 %v264_v7  ;;  %v276_v20 = vpack.c.bf16 %v115_v19, %v114_v18  ;;  %v212_v21 = vld [vmem:[%s399_s2] ss:$0 sm:$0xff]  ;;  %s204_s22 = sshll.u32 %s309_s21, 4  ;;  %s205_s22 = int_to_ptr.vmem [resolvable:$true] %s204_s22 }
   0x9   :  { %266 = vmatprep.subr.bf16.mxu0 %v306_v3  ;;  %v214_v26 = vld [vmem:[%s401_s4] ss:$0 sm:$0xff]  ;;  %s282_s3 = scalar_lea.vmem %s205_s22, 128  ;;  %p287_p1 = scmp.lt.s32.totalorder %s205_s22, %s205_s22 }
   0xa   :  { %277 = vmatpush3.bf16.msra.mxu1 %v276_v20  ;;  %p283_p0 = scmp.ne.s32.totalorder %s205_s22, %s282_s3  ;;  %p288_p2 = scmp.lt.s32.totalorder %s282_s3, %s282_s3 }
   0xc   :  { %268 = vmatpush3.bf16.msra.mxu0 %v267_v13  ;;  %p289_p3 = por %p288_p2, %p287_p1 }
   0xd   :  { %269 = vmatprep.subr.bf16.mxu0 %v306_v3 }
   0xe   :  { %p290_p4 = pnand %p289_p3, %p283_p0 }
  0x10   :  { %271 = vmatpush3.bf16.msra.mxu0 %v270_v16 }
  0x13   :  { %247 = vmatmul.mubr.msk.f32.vlgmr.msra.gmra.mrb[0].mxu0 %vm37_vm1, %v21_v17 }
  0xe6   :  { %v107_v22 = vpop.f32.mrb[0].mxu0 }
  0xe7   :  { %v108_v23 = vadd.f32 %v212_v21, %v107_v22  ;;  %v248_v24 = vpop.f32.mrb[1].mxu0 }
  0xe9   :  { %v111_v25 = vmax.f32 %v108_v23, 0.0 }
  0xeb   :  { %258 = vmatmul.mubr.msk.f32.vlgmr.msra.gmra.mrb[0].mxu1 %vm123_vm2, %v111_v25 }
 0x1be   :  { %v193_v27 = vpop.f32.mrb[0].mxu1 }
 0x1bf   :  { %v194_v28 = vadd.f32 %v214_v26, %v193_v27  ;;  %v259_v29 = vpop.f32.mrb[1].mxu1 }
 0x1c1   :  { %197 = vst [vmem:[#allocation2] sm:$0xff] %v194_v28 }
 0x1c2   :  { %293 = shalt.err (!%p290_p4)
}
 0x1c3   :  { %s294_s24 = scalar_lea.hbm %s402_s5, 128 }
 0x1c4   :  { %p295_p5 = scmp.ne.s32.totalorder %s402_s5, %s294_s24  ;;  %p298_p6 = scmp.lt.u32.totalorder %s294_s24, %s402_s5 }
 0x1c6   :  { %p300_p7 = pnand %p298_p6, %p295_p5 }
 0x1c8   :  { %303 = shalt.err (!%p300_p7)
}
 0x1c9   :  { %207 = dma.vmem_to_hbm [thread:$0]  %s205_s22, 128, %s402_s5, [#allocation3]  }
 0x1ca   :  { %304 = dma.done.wait [#allocation3], 128  }
 0x1cb   :  { %305 = vsyncadd [#allocation3], 4294967168 }
 0x1cc   :  { %211 = vsyncpa [#allocation3], 1 }

</bundles_post_ra>
